<compile_context>
chip_gen: v7x
topology: tpu7x:2x2x1
jax: 0.10.0
libtpu: 0.0.40
codegen_flags: <defaults>
</compile_context>

<pallas_src>
import functools

import jax
import jax.numpy as jnp
from jax.experimental import pallas as pl
from jax.experimental.pallas import tpu as pltpu

IN_DIM = 28 * 28   # 784
HID_DIM = 128
NEG_SLOPE = 0.01   # nn.LeakyReLU default


def adapter_kernel(x_ref, w1_ref, b1_ref, w2_ref, b2_ref, o_ref):
    # x_ref: (TB, 784), w1_ref: (784, 128), b1_ref: (1, 128) f32,
    # w2_ref: (128, 784), b2_ref: (1, 784) f32, o_ref: (TB, 784).
    cdt = w1_ref.dtype                                   # MXU operand dtype (f32 or bf16)

    # First linear + LeakyReLU (MXU matmul, f32 accumulation; VPU elementwise).
    xm = x_ref[...].astype(cdt)
    h = jnp.dot(xm, w1_ref[...], preferred_element_type=jnp.float32) + b1_ref[...]
    h = jnp.maximum(h, NEG_SLOPE * h)                    # LeakyReLU, single VPU op

    # Second linear (bias add stays f32).
    y = jnp.dot(h.astype(cdt), w2_ref[...],
                preferred_element_type=jnp.float32) + b2_ref[...]

    # Residual: re-read the pipelined, VMEM-resident input tile here instead of
    # keeping an f32 copy live across both matmuls.
    o_ref[...] = (y + x_ref[...].astype(jnp.float32)).astype(o_ref.dtype)


def prepare_params(w1, b1, w2, b2, param_dtype=jnp.bfloat16):
    """One-time parameter prep (outside the hot path).

    Takes PyTorch nn.Linear layout (w1: (128,784), w2: (784,128)) and returns
    pre-transposed, pre-cast tensors so the kernel does plain row-major matmuls.
    Biases stay f32 (tiny; added to the f32 accumulator). Keep bf16 weights on
    v5e as well: f32 matmuls decompose into multiple bf16 MXU passes there.
    """
    w1t = jnp.transpose(w1).astype(param_dtype)          # (784, 128)
    w2t = jnp.transpose(w2).astype(param_dtype)          # (128, 784)
    b1_2d = b1.reshape(1, HID_DIM).astype(jnp.float32)
    b2_2d = b2.reshape(1, IN_DIM).astype(jnp.float32)
    return w1t, b1_2d, w2t, b2_2d


def _generation_config():
    """(max batch tile, scoped-VMEM limit in bytes) per TPU generation."""
    try:
        kind = jax.devices()[0].device_kind.lower()
    except Exception:  # pragma: no cover - e.g. interpret mode off-TPU
        kind = ""
    if "v7" in kind:
        # 64 MiB physical VMEM; TB=2048 -> ~25.6 MB double-buffered x/out + ~1 MB
        # weights + intermediates, comfortably under a 48 MiB scoped limit.
        return 2048, 48 << 20
    if "v6" in kind:
        # 128 MiB physical; 48 MiB scoped limit leaves plenty of headroom at TB=2048.
        return 2048, 48 << 20
    # v5e (16 MiB scoped default, 128 MiB physical) and unknown chips: TB=1024
    # needs ~13-15 MB, so raise the limit modestly and stay conservative.
    return 1024, 24 << 20


def _batch_tile(batch, max_tile):
    """Pick the per-step batch tile.

    - Small batches (<= 256): single block; pipelining overhead isn't worth it.
    - Larger batches: at least 2 grid steps so double-buffering and the v7x
      two-TensorCore split engage, capped at the generation's VMEM budget.
      The tile is a multiple of 8 (sublane granularity for the batch axis).
    """
    if batch <= 256:
        return batch
    half = -(-batch // 2)                    # ceil(batch / 2) -> guarantees >= 2 steps
    tb = min(max_tile, half)
    tb = max(8, (tb // 8) * 8)
    return tb


@functools.partial(jax.jit, static_argnames=())
def adapter_forward(x_nchw, w1t, b1_2d, w2t, b2_2d):
    """x_nchw: (B, 1, 28, 28) or (B, 784). Remaining args from prepare_params().

    Output dtype follows the input dtype (pass bf16 x to halve activation HBM
    traffic end-to-end); accumulation and the residual add are f32 in-kernel.
    """
    x2d = x_nchw.reshape(-1, IN_DIM)                     # == torch x.view(-1, 784), free
    batch = x2d.shape[0]
    max_tile, vmem_limit = _generation_config()
    tb = _batch_tile(batch, max_tile)

    out = pl.pallas_call(
        adapter_kernel,
        out_shape=jax.ShapeDtypeStruct((batch, IN_DIM), x2d.dtype),
        grid=(pl.cdiv(batch, tb),),
        in_specs=[
            pl.BlockSpec((tb, IN_DIM), lambda i: (i, 0)),        # x: streamed per tile
            pl.BlockSpec((IN_DIM, HID_DIM), lambda i: (0, 0)),   # weights: VMEM-resident
            pl.BlockSpec((1, HID_DIM), lambda i: (0, 0)),
            pl.BlockSpec((HID_DIM, IN_DIM), lambda i: (0, 0)),
            pl.BlockSpec((1, IN_DIM), lambda i: (0, 0)),
        ],
        out_specs=pl.BlockSpec((tb, IN_DIM), lambda i: (i, 0)),
        compiler_params=pltpu.CompilerParams(
            dimension_semantics=("parallel",),                   # 2-TC split on v7x
            vmem_limit_bytes=vmem_limit),
    )(x2d, w1t, b1_2d, w2t, b2_2d)
    return out


def init_params(key):
    """Deterministic init mimicking PyTorch nn.Linear default (U[-1/sqrt(fan_in), +])."""
    k1, k2, k3, k4 = jax.random.split(key, 4)
    bound1 = 1.0 / jnp.sqrt(IN_DIM)
    bound2 = 1.0 / jnp.sqrt(HID_DIM)
    w1 = jax.random.uniform(k1, (HID_DIM, IN_DIM), jnp.float32, -bound1, bound1)
    b1 = jax.random.uniform(k2, (HID_DIM,), jnp.float32, -bound1, bound1)
    w2 = jax.random.uniform(k3, (IN_DIM, HID_DIM), jnp.float32, -bound2, bound2)
    b2 = jax.random.uniform(k4, (IN_DIM,), jnp.float32, -bound2, bound2)
    return w1, b1, w2, b2


def _reference(x2d, w1, b1, w2, b2):
    h = x2d @ w1.T + b1
    h = jnp.where(h > 0, h, NEG_SLOPE * h)
    return h @ w2.T + b2 + x2d


if __name__ == "__main__":
    key = jax.random.PRNGKey(0)
    kx, kp, kx2 = jax.random.split(key, 3)

    w1, b1, w2, b2 = init_params(kp)                          # PyTorch param layout
    params_f32 = prepare_params(w1, b1, w2, b2, param_dtype=jnp.float32)
    params_bf16 = prepare_params(w1, b1, w2, b2, param_dtype=jnp.bfloat16)

    # --- Small batch (single block path) ---
    B = 8
    x = jax.random.normal(kx, (B, 1, 28, 28), jnp.float32)    # MNIST-like NCHW input
    ref = _reference(x.reshape(-1, IN_DIM), w1, b1, w2, b2)

    out_f32 = jax.block_until_ready(adapter_forward(x, *params_f32))
    assert out_f32.shape == (B, IN_DIM)
    assert jnp.allclose(out_f32, ref, atol=1e-4, rtol=1e-4)

    out_bf16 = jax.block_until_ready(adapter_forward(x, *params_bf16))
    assert out_bf16.shape == (B, IN_DIM)
    assert out_bf16.dtype == jnp.float32
    assert jnp.allclose(out_bf16, ref, atol=5e-2, rtol=5e-2)

    # --- Multi-tile batch (exercises >=2 grid steps + ragged last tile) ---
    B2 = 260
    x2 = jax.random.normal(kx2, (B2, 1, 28, 28), jnp.float32)
    ref2 = _reference(x2.reshape(-1, IN_DIM), w1, b1, w2, b2)

    out2 = jax.block_until_ready(adapter_forward(x2, *params_bf16))
    assert out2.shape == (B2, IN_DIM)
    assert jnp.allclose(out2, ref2, atol=5e-2, rtol=5e-2)

    print("KERNEL_OK")
</pallas_src>

<mosaic_0001>
module attributes {stable_mosaic.version = 11 : i64} {
  func.func @adapter_kernel(%arg0: i32, %arg1: memref<8x784xf32, #tpu.memory_space<vmem>>, %arg2: memref<784x128xf32, #tpu.memory_space<vmem>>, %arg3: memref<1x128xf32, #tpu.memory_space<vmem>>, %arg4: memref<128x784xf32, #tpu.memory_space<vmem>>, %arg5: memref<1x784xf32, #tpu.memory_space<vmem>>, %arg6: memref<8x784xf32, #tpu.memory_space<vmem>>) attributes {dimension_semantics = [#tpu.dimension_semantics<parallel>], iteration_bounds = array<i64: 1>, scalar_prefetch = 0 : i64, scratch_operands = 0 : i64, tpu.core_type = #tpu.core_type<tc>, window_params = [{transform_indices = @transform_0, window_bounds = array<i64: 8, 784>}, {pipeline_mode = #tpu.pipeline_mode<synchronous>, transform_indices = @transform_1, window_bounds = array<i64: 784, 128>}, {pipeline_mode = #tpu.pipeline_mode<synchronous>, transform_indices = @transform_2, window_bounds = array<i64: 1, 128>}, {pipeline_mode = #tpu.pipeline_mode<synchronous>, transform_indices = @transform_3, window_bounds = array<i64: 128, 784>}, {pipeline_mode = #tpu.pipeline_mode<synchronous>, transform_indices = @transform_4, window_bounds = array<i64: 1, 784>}, {transform_indices = @transform_5, window_bounds = array<i64: 8, 784>}]} {
    %c0 = arith.constant 0 : index
    %c0_0 = arith.constant 0 : index
    %0 = vector.load %arg1[%c0, %c0_0] : memref<8x784xf32, #tpu.memory_space<vmem>>, vector<8x784xf32>
    %c0_1 = arith.constant 0 : index
    %c0_2 = arith.constant 0 : index
    %1 = vector.load %arg2[%c0_1, %c0_2] : memref<784x128xf32, #tpu.memory_space<vmem>>, vector<784x128xf32>
    %cst = arith.constant dense<0.000000e+00> : vector<8x128xf32>
    %2 = tpu.matmul %0, %1, %cst {dimension_numbers = #tpu.dot_dimension_numbers<[1], [0], [0], [1], [0, 0, 1, 1], [], []>} : vector<8x784xf32>, vector<784x128xf32>, vector<8x128xf32> -> vector<8x128xf32>
    %c0_3 = arith.constant 0 : index
    %c0_4 = arith.constant 0 : index
    %3 = vector.load %arg3[%c0_3, %c0_4] : memref<1x128xf32, #tpu.memory_space<vmem>>, vector<1x128xf32>
    %4 = vector.broadcast %3 : vector<1x128xf32> to vector<8x128xf32>
    %5 = arith.addf %2, %4 : vector<8x128xf32>
    %cst_5 = arith.constant 0.00999999977 : f32
    %6 = vector.broadcast %cst_5 : f32 to vector<8x128xf32>
    %7 = arith.mulf %6, %5 : vector<8x128xf32>
    %8 = arith.maximumf %5, %7 : vector<8x128xf32>
    %c0_6 = arith.constant 0 : index
    %c0_7 = arith.constant 0 : index
    %9 = vector.load %arg4[%c0_6, %c0_7] : memref<128x784xf32, #tpu.memory_space<vmem>>, vector<128x784xf32>
    %cst_8 = arith.constant dense<0.000000e+00> : vector<8x784xf32>
    %10 = tpu.matmul %8, %9, %cst_8 {dimension_numbers = #tpu.dot_dimension_numbers<[1], [0], [0], [1], [0, 0, 1, 1], [], []>} : vector<8x128xf32>, vector<128x784xf32>, vector<8x784xf32> -> vector<8x784xf32>
    %c0_9 = arith.constant 0 : index
    %c0_10 = arith.constant 0 : index
    %11 = vector.load %arg5[%c0_9, %c0_10] : memref<1x784xf32, #tpu.memory_space<vmem>>, vector<1x784xf32>
    %12 = vector.broadcast %11 : vector<1x784xf32> to vector<8x784xf32>
    %13 = arith.addf %10, %12 : vector<8x784xf32>
    %c0_11 = arith.constant 0 : index
    %c0_12 = arith.constant 0 : index
    %14 = vector.load %arg1[%c0_11, %c0_12] : memref<8x784xf32, #tpu.memory_space<vmem>>, vector<8x784xf32>
    %15 = arith.addf %13, %14 : vector<8x784xf32>
    %c0_13 = arith.constant 0 : index
    %c0_14 = arith.constant 0 : index
    %16 = vector.load %arg6[%c0_13, %c0_14] : memref<8x784xf32, #tpu.memory_space<vmem>>, vector<8x784xf32>
    tpu.vector_store %arg6[%c0_13, %c0_14], %15 {strides = array<i32>} : memref<8x784xf32, #tpu.memory_space<vmem>>, vector<8x784xf32>,
    return
  }
  func.func @transform_0(%arg0: i32) -> (i32, i32) {
    %c0_i32 = arith.constant 0 : i32
    %c0_i32_0 = arith.constant 0 : i32
    return %arg0, %c0_i32 : i32, i32
  }
  func.func @transform_1(%arg0: i32) -> (i32, i32) {
    %c0_i32 = arith.constant 0 : i32
    %c0_i32_0 = arith.constant 0 : i32
    %c0_i32_1 = arith.constant 0 : i32
    return %c0_i32, %c0_i32_0 : i32, i32
  }
  func.func @transform_2(%arg0: i32) -> (i32, i32) {
    %c0_i32 = arith.constant 0 : i32
    %c0_i32_0 = arith.constant 0 : i32
    %c0_i32_1 = arith.constant 0 : i32
    return %c0_i32, %c0_i32_0 : i32, i32
  }
  func.func @transform_3(%arg0: i32) -> (i32, i32) {
    %c0_i32 = arith.constant 0 : i32
    %c0_i32_0 = arith.constant 0 : i32
    %c0_i32_1 = arith.constant 0 : i32
    return %c0_i32, %c0_i32_0 : i32, i32
  }
  func.func @transform_4(%arg0: i32) -> (i32, i32) {
    %c0_i32 = arith.constant 0 : i32
    %c0_i32_0 = arith.constant 0 : i32
    %c0_i32_1 = arith.constant 0 : i32
    return %c0_i32, %c0_i32_0 : i32, i32
  }
  func.func @transform_5(%arg0: i32) -> (i32, i32) {
    %c0_i32 = arith.constant 0 : i32
    %c0_i32_0 = arith.constant 0 : i32
    return %arg0, %c0_i32 : i32, i32
  }
}

</mosaic_0001>

<bundles_post_ra>
// kernel: adapter_forward.1
= control target key start
LH: loop header
LB: loop body
LE: loop exit
PB: predicated region body
PF: predicated region fallthrough
CT: control target
= control target key end

     0   :  { %s2050_s0 = inlined_call_operand.vmem [shape: f32[8,784], index: 0, kind: input, shape index: {}]   ;;  %s2051_s1 = inlined_call_operand.vmem [shape: f32[784,128], index: 1, kind: input, shape index: {}]   ;;  %s2052_s2 = inlined_call_operand.vmem [shape: f32[1,128], index: 2, kind: input, shape index: {}]   ;;  %s2053_s3 = inlined_call_operand.vmem [shape: f32[128,784], index: 3, kind: input, shape index: {}]   ;;  %s2054_s4 = inlined_call_operand.vmem [shape: f32[1,784], index: 4, kind: input, shape index: {}]   ;;  %s2055_s5 = inlined_call_operand.hbm [shape: f32[8,784], index: 5, kind: output, shape index: {}]  }
   0x1   :  { %v44_v0 = vld [vmem:[%s2051_s1 + $0x80] sm:$0xff]  ;;  %v45_v1 = vld [vmem:[%s2051_s1 + $0x88] sm:$0xff]  ;;  %v46_v11 = vld [vmem:[%s2051_s1 + $0x90] sm:$0xff] }
   0x2   :  { %v28_v2 = vld [vmem:[%s2051_s1] sm:$0xff]  ;;  %v1048_v3 = vpack.c.bf16 %v45_v1, %v44_v0  ;;  %v29_v4 = vld [vmem:[%s2051_s1 + $0x8] sm:$0xff]  ;;  %v47_v13 = vld [vmem:[%s2051_s1 + $0x98] sm:$0xff] }
   0x3   :  { %v76_v5 = vld [vmem:[%s2051_s1 + $0x180] sm:$0xff]  ;;  %v77_v6 = vld [vmem:[%s2051_s1 + $0x188] sm:$0xff]  ;;  %v1050_v7 = vpack.c.bf16 %v29_v4, %v28_v2  ;;  %v30_v14 = vld [vmem:[%s2051_s1 + $0x10] sm:$0xff]  ;;  %v1052_v16 = vpack.c.bf16 %v47_v13, %v46_v11 }
   0x4   :  { %v1080_v8 = vpack.c.bf16 %v77_v6, %v76_v5  ;;  %v60_v9 = vld [vmem:[%s2051_s1 + $0x100] sm:$0xff]  ;;  %v61_v10 = vld [vmem:[%s2051_s1 + $0x108] sm:$0xff]  ;;  %1049 = vmatprep.subr.bf16.mxu0 %v1048_v3  ;;  %v31_v15 = vld [vmem:[%s2051_s1 + $0x18] sm:$0xff] }
   0x5   :  { %v1082_v12 = vpack.c.bf16 %v61_v10, %v60_v9  ;;  %1051 = vmatpush3.bf16.msra.mxu0 %v1050_v7  ;;  %v1054_v17 = vpack.c.bf16 %v31_v15, %v30_v14  ;;  %v78_v18 = vld [vmem:[%s2051_s1 + $0x190] sm:$0xff]  ;;  %v79_v19 = vld [vmem:[%s2051_s1 + $0x198] sm:$0xff]  ;;  %v48_v23 = vld [vmem:[%s2051_s1 + $0xa0] sm:$0xff] }
   0x6   :  { %1081 = vmatprep.subr.bf16.mxu1 %v1080_v8  ;;  %v62_v20 = vld [vmem:[%s2051_s1 + $0x110] sm:$0xff]  ;;  %v1084_v21 = vpack.c.bf16 %v79_v19, %v78_v18  ;;  %v63_v22 = vld [vmem:[%s2051_s1 + $0x118] sm:$0xff]  ;;  %v49_v24 = vld [vmem:[%s2051_s1 + $0xa8] sm:$0xff]  ;;  %1053 = vmatprep.subr.bf16.mxu0 %v1052_v16 }
   0x7   :  { %1083 = vmatpush3.bf16.msra.mxu1 %v1082_v12  ;;  %v1086_v25 = vpack.c.bf16 %v63_v22, %v62_v20  ;;  %v1056_v26 = vpack.c.bf16 %v49_v24, %v48_v23  ;;  %v32_v27 = vld [vmem:[%s2051_s1 + $0x20] sm:$0xff]  ;;  %v33_v28 = vld [vmem:[%s2051_s1 + $0x28] sm:$0xff]  ;;  %v50_v35 = vld [vmem:[%s2051_s1 + $0xb0] sm:$0xff] }
   0x8   :  { %v80_v29 = vld [vmem:[%s2051_s1 + $0x1a0] sm:$0xff]  ;;  %1085 = vmatprep.subr.bf16.mxu1 %v1084_v21  ;;  %v81_v30 = vld [vmem:[%s2051_s1 + $0x1a8] sm:$0xff]  ;;  %v1058_v33 = vpack.c.bf16 %v33_v28, %v32_v27  ;;  %v51_v36 = vld [vmem:[%s2051_s1 + $0xb8] sm:$0xff] }
   0x9   :  { %v64_v31 = vld [vmem:[%s2051_s1 + $0x120] sm:$0xff]  ;;  %v65_v32 = vld [vmem:[%s2051_s1 + $0x128] sm:$0xff]  ;;  %1055 = vmatpush3.bf16.msra.mxu0 %v1054_v17  ;;  %v1088_v34 = vpack.c.bf16 %v81_v30, %v80_v29  ;;  %v34_v37 = vld [vmem:[%s2051_s1 + $0x30] sm:$0xff]  ;;  %v1060_v39 = vpack.c.bf16 %v51_v36, %v50_v35 }
   0xa   :  { %1057 = vmatprep.subr.bf16.mxu0 %v1056_v26  ;;  %v1090_v38 = vpack.c.bf16 %v65_v32, %v64_v31  ;;  %v35_v40 = vld [vmem:[%s2051_s1 + $0x38] sm:$0xff]  ;;  %v82_v41 = vld [vmem:[%s2051_s1 + $0x1b0] sm:$0xff]  ;;  %v52_v46 = vld [vmem:[%s2051_s1 + $0xc0] sm:$0xff] }
   0xb   :  { %1087 = vmatpush3.bf16.msra.mxu1 %v1086_v25  ;;  %v83_v42 = vld [vmem:[%s2051_s1 + $0x1b8] sm:$0xff]  ;;  %v66_v44 = vld [vmem:[%s2051_s1 + $0x130] sm:$0xff]  ;;  %v53_v47 = vld [vmem:[%s2051_s1 + $0xc8] sm:$0xff]  ;;  %v1062_v48 = vpack.c.bf16 %v35_v40, %v34_v37 }
   0xc   :  { %1089 = vmatprep.subr.bf16.mxu1 %v1088_v34  ;;  %v1092_v43 = vpack.c.bf16 %v83_v42, %v82_v41  ;;  %v67_v45 = vld [vmem:[%s2051_s1 + $0x138] sm:$0xff]  ;;  %v84_v49 = vld [vmem:[%s2051_s1 + $0x1c0] sm:$0xff]  ;;  %v85_v50 = vld [vmem:[%s2051_s1 + $0x1c8] sm:$0xff]  ;;  %v1064_v52 = vpack.c.bf16 %v53_v47, %v52_v46 }
   0xd   :  { %1059 = vmatpush3.bf16.msra.mxu0 %v1058_v33  ;;  %v1094_v51 = vpack.c.bf16 %v67_v45, %v66_v44  ;;  %v36_v53 = vld [vmem:[%s2051_s1 + $0x40] sm:$0xff]  ;;  %v37_v54 = vld [vmem:[%s2051_s1 + $0x48] sm:$0xff]  ;;  %v1096_v56 = vpack.c.bf16 %v85_v50, %v84_v49  ;;  %v54_v58 = vld [vmem:[%s2051_s1 + $0xd0] sm:$0xff]  ;;  %v1295_v50 = vmov 0.0|0.0  }
   0xe   :  { %1061 = vmatprep.subr.bf16.mxu0 %v1060_v39  ;;  %v68_v55 = vld [vmem:[%s2051_s1 + $0x140] sm:$0xff]  ;;  %v69_v57 = vld [vmem:[%s2051_s1 + $0x148] sm:$0xff]  ;;  %v55_v59 = vld [vmem:[%s2051_s1 + $0xd8] sm:$0xff]  ;;  %v1066_v62 = vpack.c.bf16 %v37_v54, %v36_v53 }
   0xf   :  { %1091 = vmatpush3.bf16.msra.mxu1 %v1090_v38  ;;  %v86_v60 = vld [vmem:[%s2051_s1 + $0x1d0] sm:$0xff]  ;;  %v87_v61 = vld [vmem:[%s2051_s1 + $0x1d8] sm:$0xff]  ;;  %v1098_v63 = vpack.c.bf16 %v69_v57, %v68_v55  ;;  %v1068_v0 = vpack.c.bf16 %v55_v59, %v54_v58  ;;  %v56_v6 = vld [vmem:[%s2051_s1 + $0xe0] sm:$0xff] }
  0x10   :  { %1093 = vmatprep.subr.bf16.mxu1 %v1092_v43  ;;  %v38_v1 = vld [vmem:[%s2051_s1 + $0x50] sm:$0xff]  ;;  %v39_v2 = vld [vmem:[%s2051_s1 + $0x58] sm:$0xff]  ;;  %v1100_v4 = vpack.c.bf16 %v87_v61, %v86_v60  ;;  %v57_v7 = vld [vmem:[%s2051_s1 + $0xe8] sm:$0xff] }
  0x11   :  { %1063 = vmatpush3.bf16.msra.mxu0 %v1062_v48  ;;  %v70_v3 = vld [vmem:[%s2051_s1 + $0x150] sm:$0xff]  ;;  %v71_v5 = vld [vmem:[%s2051_s1 + $0x158] sm:$0xff]  ;;  %v88_v8 = vld [vmem:[%s2051_s1 + $0x1e0] sm:$0xff]  ;;  %v1070_v10 = vpack.c.bf16 %v39_v2, %v38_v1  ;;  %v1072_v14 = vpack.c.bf16 %v57_v7, %v56_v6 }
  0x12   :  { %1065 = vmatprep.subr.bf16.mxu0 %v1064_v52  ;;  %v89_v9 = vld [vmem:[%s2051_s1 + $0x1e8] sm:$0xff]  ;;  %v40_v11 = vld [vmem:[%s2051_s1 + $0x60] sm:$0xff]  ;;  %v1102_v13 = vpack.c.bf16 %v71_v5, %v70_v3  ;;  %v58_v19 = vld [vmem:[%s2051_s1 + $0xf0] sm:$0xff] }
  0x13   :  { %1095 = vmatpush3.bf16.msra.mxu1 %v1094_v51  ;;  %v1491_v12 = vld [vmem:[%s2050_s0 + $0x8] sm:$0xff]  ;;  %v72_v16 = vld [vmem:[%s2051_s1 + $0x160] sm:$0xff]  ;;  %v1104_v18 = vpack.c.bf16 %v89_v9, %v88_v8  ;;  %v59_v20 = vld [vmem:[%s2051_s1 + $0xf8] sm:$0xff] }
  0x14   :  { %1097 = vmatprep.subr.bf16.mxu1 %v1096_v56  ;;  %v41_v15 = vld [vmem:[%s2051_s1 + $0x68] sm:$0xff]  ;;  %201 = vmatprep.mubr.f32.mxu0 %v1491_v12  ;;  %v1512_v21 = vld [vmem:[%s2050_s0 + $0x18] sm:$0xff]  ;;  %v90_v22 = vld [vmem:[%s2051_s1 + $0x1f0] sm:$0xff]  ;;  %v1076_v26 = vpack.c.bf16 %v59_v20, %v58_v19 }
  0x15   :  { %1067 = vmatpush3.bf16.msra.mxu0 %v1066_v62  ;;  %v73_v17 = vld [vmem:[%s2051_s1 + $0x168] sm:$0xff]  ;;  %v91_v23 = vld [vmem:[%s2051_s1 + $0x1f8] sm:$0xff]  ;;  %271 = vmatprep.mubr.f32.mxu1 %v1512_v21  ;;  %v1074_v24 = vpack.c.bf16 %v41_v15, %v40_v11  ;;  %v42_v27 = vld [vmem:[%s2051_s1 + $0x70] sm:$0xff] }
  0x16   :  { %1069 = vmatprep.subr.bf16.mxu0 %v1068_v0  ;;  %v1106_v25 = vpack.c.bf16 %v73_v17, %v72_v16  ;;  %v43_v28 = vld [vmem:[%s2051_s1 + $0x78] sm:$0xff]  ;;  %v74_v29 = vld [vmem:[%s2051_s1 + $0x170] sm:$0xff]  ;;  %v1108_v30 = vpack.c.bf16 %v91_v23, %v90_v22  ;;  %v108_v32 = vld [vmem:[%s2051_s1 + $0x280] sm:$0xff] }
  0x17   :  { %1099 = vmatpush3.bf16.msra.mxu1 %v1098_v63  ;;  %v75_v31 = vld [vmem:[%s2051_s1 + $0x178] sm:$0xff]  ;;  %v109_v33 = vld [vmem:[%s2051_s1 + $0x288] sm:$0xff]  ;;  %v1078_v34 = vpack.c.bf16 %v43_v28, %v42_v27  ;;  %v92_v37 = vld [vmem:[%s2051_s1 + $0x200] sm:$0xff] }
  0x18   :  { %1101 = vmatprep.subr.bf16.mxu1 %v1100_v4  ;;  %v1110_v35 = vpack.c.bf16 %v75_v31, %v74_v29  ;;  %v1112_v36 = vpack.c.bf16 %v109_v33, %v108_v32  ;;  %v93_v38 = vld [vmem:[%s2051_s1 + $0x208] sm:$0xff]  ;;  %v110_v39 = vld [vmem:[%s2051_s1 + $0x290] sm:$0xff]  ;;  %v111_v40 = vld [vmem:[%s2051_s1 + $0x298] sm:$0xff] }
  0x19   :  { %1071 = vmatpush3.bf16.msra.mxu0 %v1070_v10  ;;  %v1554_v41 = vld [vmem:[%s2050_s0] sm:$0xff]  ;;  %v1114_v42 = vpack.c.bf16 %v93_v38, %v92_v37  ;;  %v1559_v43 = vld [vmem:[%s2050_s0 + $0x10] sm:$0xff]  ;;  %v1116_v45 = vpack.c.bf16 %v111_v40, %v110_v39  ;;  %v95_v46 = vld [vmem:[%s2051_s1 + $0x218] sm:$0xff] }
  0x1a   :  { %1073 = vmatprep.subr.bf16.mxu0 %v1072_v14  ;;  %v94_v44 = vld [vmem:[%s2051_s1 + $0x210] sm:$0xff]  ;;  %v112_v47 = vld [vmem:[%s2051_s1 + $0x2a0] sm:$0xff]  ;;  %v113_v48 = vld [vmem:[%s2051_s1 + $0x2a8] sm:$0xff] }
  0x1b   :  { %1103 = vmatpush3.bf16.msra.mxu1 %v1102_v13  ;;  %v1576_v49 = vld [vmem:[%s2050_s0 + $0x28] sm:$0xff]  ;;  %v124_v51 = vld [vmem:[%s2051_s1 + $0x300] sm:$0xff] }
  0x1c   :  { %1105 = vmatprep.subr.bf16.mxu1 %v1104_v18  ;;  %v125_v52 = vld [vmem:[%s2051_s1 + $0x308] sm:$0xff] }
  0x1d   :  { %1075 = vmatpush3.bf16.msra.mxu0 %v1074_v24  ;;  %v1145_v53 = vpack.c.bf16 %v125_v52, %v124_v51 }
  0x1e   :  { %1077 = vmatprep.subr.bf16.mxu0 %v1076_v26 }
  0x1f   :  { %1107 = vmatpush3.bf16.msra.mxu1 %v1106_v25 }
  0x20   :  { %1109 = vmatprep.subr.bf16.mxu1 %v1108_v30 }
  0x21   :  { %1079 = vmatpush3.bf16.msra.mxu0 %v1078_v34 }
  0x22   :  { %1113 = vmatprep.subr.bf16.mxu0 %v1112_v36 }
  0x23   :  { %1111 = vmatpush3.bf16.msra.mxu1 %v1110_v35 }
  0x24   :  { %1144 = vmatprep.subr.bf16.mxu1 %v1295_v50  ;;  %202 = vmatmul.mubr.f32.vlgmr.msra.gmra.mrb[0].mxu0 %v1554_v41 }
  0x25   :  { %10 = vsyncpa [#allocation3], 0  ;;  %1115 = vmatpush3.bf16.msra.mxu0 %v1114_v42  ;;  %v1118_v54 = vpack.c.bf16 %v95_v46, %v94_v44  ;;  %v1120_v55 = vpack.c.bf16 %v113_v48, %v112_v47  ;;  %v96_v56 = vld [vmem:[%s2051_s1 + $0x220] sm:$0xff]  ;;  %v97_v57 = vld [vmem:[%s2051_s1 + $0x228] sm:$0xff]  ;;  %341 = vmatprep.mubr.f32.mxu0 %v1576_v49  ;;  %vm1296_vm0 = vmmov 0   ;;  %v1297_v60 = vmov 0.0  }
  0x26   :  { %272 = vmatmul.mubr.f32.vlgmr.msra.gmra.mrb[0].mxu1 %v1559_v43  ;;  %1117 = vmatprep.subr.bf16.mxu0 %v1116_v45  ;;  %v114_v58 = vld [vmem:[%s2051_s1 + $0x2b0] sm:$0xff]  ;;  %v115_v59 = vld [vmem:[%s2051_s1 + $0x2b8] sm:$0xff]  ;;  %vm133_vm1 = vcmask 130048   ;;  %v1122_v62 = vpack.c.bf16 %v97_v57, %v96_v56  ;;  %v116_v2 = vld [vmem:[%s2051_s1 + $0x2c0] sm:$0xff] }
  0x27   :  { %1146 = vmatpush3.bf16.msra.mxu1 %v1145_v53  ;;  %1010 = vmatprep.mubr.msk.f32.mxu1 %vm1296_vm0, %v1297_v60  ;;  %v1605_v61 = vld [vmem:[%s2050_s0 + $0x30] sm:$0xff]  ;;  %v1124_v63 = vpack.c.bf16 %v115_v59, %v114_v58  ;;  %v99_v1 = vld [vmem:[%s2051_s1 + $0x238] sm:$0xff]  ;;  %v117_v3 = vld [vmem:[%s2051_s1 + $0x2c8] sm:$0xff] }
  0x28   :  { %v98_v0 = vld [vmem:[%s2051_s1 + $0x230] sm:$0xff]  ;;  %v1128_v5 = vpack.c.bf16 %v117_v3, %v116_v2  ;;  %v100_v6 = vld [vmem:[%s2051_s1 + $0x240] sm:$0xff]  ;;  %v101_v7 = vld [vmem:[%s2051_s1 + $0x248] sm:$0xff] }
  0x29   :  { %1119 = vmatpush3.bf16.msra.mxu0 %v1118_v54  ;;  %v1126_v4 = vpack.c.bf16 %v99_v1, %v98_v0  ;;  %v118_v8 = vld [vmem:[%s2051_s1 + $0x2d0] sm:$0xff]  ;;  %v119_v9 = vld [vmem:[%s2051_s1 + $0x2d8] sm:$0xff]  ;;  %v1130_v10 = vpack.c.bf16 %v101_v7, %v100_v6  ;;  %v120_v15 = vld [vmem:[%s2051_s1 + $0x2e0] sm:$0xff] }
  0x2a   :  { %1121 = vmatprep.subr.bf16.mxu0 %v1120_v55  ;;  %1011 = vmatmul.mubr.msk.f32.vlgmr.msra.gmra.mrb[2].mxu1 %vm133_vm1, %v1605_v61  ;;  %v1132_v11 = vpack.c.bf16 %v119_v9, %v118_v8  ;;  %v102_v13 = vld [vmem:[%s2051_s1 + $0x250] sm:$0xff]  ;;  %v103_v14 = vld [vmem:[%s2051_s1 + $0x258] sm:$0xff]  ;;  %v121_v16 = vld [vmem:[%s2051_s1 + $0x2e8] sm:$0xff] }
  0x2b   :  { %632 = vmatprep.mubr.f32.mxu1 %v1297_v60  ;;  %v1134_v17 = vpack.c.bf16 %v103_v14, %v102_v13  ;;  %v1136_v18 = vpack.c.bf16 %v121_v16, %v120_v15  ;;  %v104_v19 = vld [vmem:[%s2051_s1 + $0x260] sm:$0xff]  ;;  %v105_v20 = vld [vmem:[%s2051_s1 + $0x268] sm:$0xff]  ;;  %v122_v22 = vld [vmem:[%s2051_s1 + $0x2f0] sm:$0xff] }
  0x2c   :  { %v123_v23 = vld [vmem:[%s2051_s1 + $0x2f8] sm:$0xff]  ;;  %v1138_v24 = vpack.c.bf16 %v105_v20, %v104_v19  ;;  %v106_v26 = vld [vmem:[%s2051_s1 + $0x270] sm:$0xff]  ;;  %v1667_v29 = vld [vmem:[%s2050_s0 + $0x20] sm:$0xff] }
  0x2d   :  { %1123 = vmatpush3.bf16.msra.mxu0 %v1122_v62  ;;  %v1140_v25 = vpack.c.bf16 %v123_v23, %v122_v22  ;;  %v107_v27 = vld [vmem:[%s2051_s1 + $0x278] sm:$0xff]  ;;  %v420_v30 = vld [vmem:[%s2053_s3 + $0x8] sm:$0xff]  ;;  %v427_v31 = vld [vmem:[%s2053_s3 + $0x40] sm:$0xff] }
  0x2e   :  { %1125 = vmatprep.subr.bf16.mxu0 %v1124_v63  ;;  %v1142_v28 = vpack.c.bf16 %v107_v27, %v106_v26  ;;  %v422_v32 = vld [vmem:[%s2053_s3 + $0x18] sm:$0xff]  ;;  %v1147_v33 = vpack.c.bf16 %v427_v31, %v420_v30  ;;  %v429_v34 = vld [vmem:[%s2053_s3 + $0x50] sm:$0xff]  ;;  %v419_v35 = vld [vmem:[%s2053_s3] sm:$0xff] }
  0x2f   :  { %v426_v36 = vld [vmem:[%s2053_s3 + $0x38] sm:$0xff]  ;;  %v1179_v37 = vpack.c.bf16 %v429_v34, %v422_v32  ;;  %v421_v39 = vld [vmem:[%s2053_s3 + $0x10] sm:$0xff]  ;;  %v428_v40 = vld [vmem:[%s2053_s3 + $0x48] sm:$0xff] }
  0x30   :  { %v1149_v38 = vpack.c.bf16 %v426_v36, %v419_v35  ;;  %v434_v42 = vld [vmem:[%s2053_s3 + $0x78] sm:$0xff]  ;;  %1148 = vmatprep.subr.bf16.mxu1 %v1147_v33  ;;  %v1181_v44 = vpack.c.bf16 %v428_v40, %v421_v39  ;;  %v441_v45 = vld [vmem:[%s2053_s3 + $0xb0] sm:$0xff]  ;;  %v436_v46 = vld [vmem:[%s2053_s3 + $0x88] sm:$0xff] }
  0x31   :  { %1127 = vmatpush3.bf16.msra.mxu0 %v1126_v4  ;;  %v443_v47 = vld [vmem:[%s2053_s3 + $0xc0] sm:$0xff]  ;;  %v1151_v48 = vpack.c.bf16 %v441_v45, %v434_v42  ;;  %v433_v52 = vld [vmem:[%s2053_s3 + $0x70] sm:$0xff]  ;;  %v440_v53 = vld [vmem:[%s2053_s3 + $0xa8] sm:$0xff] }
  0x32   :  { %1129 = vmatprep.subr.bf16.mxu0 %v1128_v5  ;;  %1150 = vmatpush1.bf16.msra.mxu1 %v1149_v38  ;;  %v1183_v51 = vpack.c.bf16 %v443_v47, %v436_v46  ;;  %v435_v54 = vld [vmem:[%s2053_s3 + $0x80] sm:$0xff]  ;;  %v1153_v55 = vpack.c.bf16 %v440_v53, %v433_v52  ;;  %v442_v56 = vld [vmem:[%s2053_s3 + $0xb8] sm:$0xff]  ;;  %v448_v57 = vld [vmem:[%s2053_s3 + $0xe8] sm:$0xff] }
  0x33   :  { %v455_v58 = vld [vmem:[%s2053_s3 + $0x120] sm:$0xff]  ;;  %1152 = vmatprep.subr.bf16.mxu1 %v1151_v48  ;;  %v1185_v59 = vpack.c.bf16 %v442_v56, %v435_v54  ;;  %v450_v63 = vld [vmem:[%s2053_s3 + $0xf8] sm:$0xff]  ;;  %v457_v0 = vld [vmem:[%s2053_s3 + $0x130] sm:$0xff] }
  0x34   :  { %v1155_v62 = vpack.c.bf16 %v455_v58, %v448_v57  ;;  %v447_v1 = vld [vmem:[%s2053_s3 + $0xe0] sm:$0xff]  ;;  %v1187_v2 = vpack.c.bf16 %v457_v0, %v450_v63  ;;  %v454_v3 = vld [vmem:[%s2053_s3 + $0x118] sm:$0xff]  ;;  %v449_v4 = vld [vmem:[%s2053_s3 + $0xf0] sm:$0xff] }
  0x35   :  { %1131 = vmatpush3.bf16.msra.mxu0 %v1130_v10  ;;  %v456_v5 = vld [vmem:[%s2053_s3 + $0x128] sm:$0xff]  ;;  %v1157_v6 = vpack.c.bf16 %v454_v3, %v447_v1  ;;  %v462_v7 = vld [vmem:[%s2053_s3 + $0x158] sm:$0xff]  ;;  %v469_v8 = vld [vmem:[%s2053_s3 + $0x190] sm:$0xff] }
  0x36   :  { %1133 = vmatprep.subr.bf16.mxu0 %v1132_v11  ;;  %1154 = vmatpush1.bf16.msra.mxu1 %v1153_v55  ;;  %v464_v9 = vld [vmem:[%s2053_s3 + $0x168] sm:$0xff]  ;;  %v1189_v10 = vpack.c.bf16 %v456_v5, %v449_v4  ;;  %v1159_v11 = vpack.c.bf16 %v469_v8, %v462_v7  ;;  %v471_v13 = vld [vmem:[%s2053_s3 + $0x1a0] sm:$0xff]  ;;  %v461_v14 = vld [vmem:[%s2053_s3 + $0x150] sm:$0xff] }
  0x37   :  { %1156 = vmatprep.subr.bf16.mxu1 %v1155_v62  ;;  %v468_v15 = vld [vmem:[%s2053_s3 + $0x188] sm:$0xff]  ;;  %v1191_v16 = vpack.c.bf16 %v471_v13, %v464_v9  ;;  %v483_v20 = vld [vmem:[%s2053_s3 + $0x200] sm:$0xff]  ;;  %v478_v22 = vld [vmem:[%s2053_s3 + $0x1d8] sm:$0xff] }
  0x38   :  { %v476_v19 = vld [vmem:[%s2053_s3 + $0x1c8] sm:$0xff]  ;;  %v485_v23 = vld [vmem:[%s2053_s3 + $0x210] sm:$0xff]  ;;  %v475_v27 = vld [vmem:[%s2053_s3 + $0x1c0] sm:$0xff] }
  0x39   :  { %1135 = vmatpush3.bf16.msra.mxu0 %v1134_v17  ;;  %v463_v17 = vld [vmem:[%s2053_s3 + $0x160] sm:$0xff]  ;;  %v1163_v26 = vpack.c.bf16 %v483_v20, %v476_v19  ;;  %v477_v30 = vld [vmem:[%s2053_s3 + $0x1d0] sm:$0xff]  ;;  %v1195_v31 = vpack.c.bf16 %v485_v23, %v478_v22  ;;  %v484_v32 = vld [vmem:[%s2053_s3 + $0x208] sm:$0xff] }
  0x3a   :  { %1137 = vmatprep.subr.bf16.mxu0 %v1136_v18  ;;  %v470_v18 = vld [vmem:[%s2053_s3 + $0x198] sm:$0xff]  ;;  %1158 = vmatpush1.bf16.msra.mxu1 %v1157_v6  ;;  %v497_v34 = vld [vmem:[%s2053_s3 + $0x270] sm:$0xff]  ;;  %v492_v35 = vld [vmem:[%s2053_s3 + $0x248] sm:$0xff]  ;;  %v1197_v38 = vpack.c.bf16 %v484_v32, %v477_v30 }
  0x3b   :  { %1160 = vmatprep.subr.bf16.mxu1 %v1159_v11  ;;  %v490_v33 = vld [vmem:[%s2053_s3 + $0x238] sm:$0xff]  ;;  %v499_v36 = vld [vmem:[%s2053_s3 + $0x280] sm:$0xff]  ;;  %v489_v42 = vld [vmem:[%s2053_s3 + $0x230] sm:$0xff] }
  0x3c   :  { %v1167_v39 = vpack.c.bf16 %v497_v34, %v490_v33  ;;  %v1199_v40 = vpack.c.bf16 %v499_v36, %v492_v35  ;;  %v491_v45 = vld [vmem:[%s2053_s3 + $0x240] sm:$0xff]  ;;  %v498_v47 = vld [vmem:[%s2053_s3 + $0x278] sm:$0xff]  ;;  %v513_v55 = vld [vmem:[%s2053_s3 + $0x2f0] sm:$0xff] }
  0x3d   :  { %1139 = vmatpush3.bf16.msra.mxu0 %v1138_v24  ;;  %v1161_v24 = vpack.c.bf16 %v468_v15, %v461_v14  ;;  %v1201_v48 = vpack.c.bf16 %v498_v47, %v491_v45  ;;  %v511_v52 = vld [vmem:[%s2053_s3 + $0x2e0] sm:$0xff]  ;;  %v506_v53 = vld [vmem:[%s2053_s3 + $0x2b8] sm:$0xff]  ;;  %v505_v62 = vld [vmem:[%s2053_s3 + $0x2b0] sm:$0xff] }
  0x3e   :  { %1141 = vmatprep.subr.bf16.mxu0 %v1140_v25  ;;  %v1193_v25 = vpack.c.bf16 %v470_v18, %v463_v17  ;;  %v503_v56 = vld [vmem:[%s2053_s3 + $0x2a0] sm:$0xff]  ;;  %v510_v57 = vld [vmem:[%s2053_s3 + $0x2d8] sm:$0xff]  ;;  %v1203_v58 = vpack.c.bf16 %v513_v55, %v506_v53  ;;  %v512_v63 = vld [vmem:[%s2053_s3 + $0x2e8] sm:$0xff] }
  0x3f   :  { %1162 = vmatpush1.bf16.msra.mxu1 %v1161_v24  ;;  %v1205_v0 = vpack.c.bf16 %v512_v63, %v505_v62  ;;  %v518_v1 = vld [vmem:[%s2053_s3 + $0x318] sm:$0xff]  ;;  %v520_v3 = vld [vmem:[%s2053_s3 + $0x328] sm:$0xff]  ;;  %v527_v5 = vld [vmem:[%s2053_s3 + $0x360] sm:$0xff] }
  0x40   :  { %1164 = vmatprep.subr.bf16.mxu1 %v1163_v26  ;;  %v517_v6 = vld [vmem:[%s2053_s3 + $0x310] sm:$0xff]  ;;  %v524_v7 = vld [vmem:[%s2053_s3 + $0x348] sm:$0xff]  ;;  %v1207_v8 = vpack.c.bf16 %v527_v5, %v520_v3  ;;  %v526_v11 = vld [vmem:[%s2053_s3 + $0x358] sm:$0xff] }
  0x41   :  { %1143 = vmatpush3.bf16.msra.mxu0 %v1142_v28  ;;  %v482_v28 = vld [vmem:[%s2053_s3 + $0x1f8] sm:$0xff]  ;;  %v1177_v9 = vpack.c.bf16 %v524_v7, %v517_v6  ;;  %v424_v14 = vld [vmem:[%s2053_s3 + $0x28] sm:$0xff]  ;;  %v431_v15 = vld [vmem:[%s2053_s3 + $0x60] sm:$0xff] }
  0x42   :  { %1180 = vmatprep.subr.bf16.mxu0 %v1179_v37  ;;  %v1165_v37 = vpack.c.bf16 %v482_v28, %v475_v27  ;;  %v879_v18 = vld [vmem:[%s2052_s2] ss:$0 sm:$0xff]  ;;  %v430_v36 = vld [vmem:[%s2053_s3 + $0x58] sm:$0xff]  ;;  %v453_v63 = vld [vmem:[%s2053_s3 + $0x110] sm:$0xff] }
  0x43   :  { %v423_v34 = vld [vmem:[%s2053_s3 + $0x20] sm:$0xff]  ;;  %v446_v53 = vld [vmem:[%s2053_s3 + $0xd8] sm:$0xff]  ;;  %v465_v5 = vld [vmem:[%s2053_s3 + $0x170] sm:$0xff] }
  0x44   :  { %342 = vmatmul.mubr.f32.vlgmr.msra.gmra.mrb[2].mxu0 %v1667_v29  ;;  %1166 = vmatpush1.bf16.msra.mxu1 %v1165_v37  ;;  %v425_v37 = vld [vmem:[%s2053_s3 + $0x30] sm:$0xff]  ;;  %v459_v55 = vld [vmem:[%s2053_s3 + $0x140] sm:$0xff]  ;;  %v458_v62 = vld [vmem:[%s2053_s3 + $0x138] sm:$0xff] }
  0x45   :  { %703 = vmatprep.mubr.f32.mxu0 %v1297_v60  ;;  %1182 = vmatpush1.bf16.msra.mxu0 %v1181_v44  ;;  %v496_v44 = vld [vmem:[%s2053_s3 + $0x268] sm:$0xff] }
  0x46   :  { %1184 = vmatprep.subr.bf16.mxu0 %v1183_v51  ;;  %1168 = vmatprep.subr.bf16.mxu1 %v1167_v39  ;;  %v1169_v46 = vpack.c.bf16 %v496_v44, %v489_v42  ;;  %v504_v51 = vld [vmem:[%s2053_s3 + $0x2a8] sm:$0xff]  ;;  %v438_v39 = vld [vmem:[%s2053_s3 + $0x98] sm:$0xff]  ;;  %v1213_v44 = vpack.c.bf16 %v430_v36, %v423_v34  ;;  %v507_v34 = vld [vmem:[%s2053_s3 + $0x2c0] sm:$0xff] }
  0x47   :  { %v1171_v54 = vpack.c.bf16 %v511_v52, %v504_v51  ;;  %v444_v51 = vld [vmem:[%s2053_s3 + $0xc8] sm:$0xff]  ;;  %v439_v52 = vld [vmem:[%s2053_s3 + $0xa0] sm:$0xff]  ;;  %v514_v36 = vld [vmem:[%s2053_s3 + $0x2f8] sm:$0xff] }
  0x48   :  { %1170 = vmatpush1.bf16.msra.mxu1 %v1169_v46  ;;  %v437_v46 = vld [vmem:[%s2053_s3 + $0x90] sm:$0xff]  ;;  %v472_v7 = vld [vmem:[%s2053_s3 + $0x1a8] sm:$0xff] }
  0x49   :  { %1186 = vmatpush1.bf16.msra.mxu0 %v1185_v59  ;;  %v1173_v59 = vpack.c.bf16 %v510_v57, %v503_v56  ;;  %1172 = vmatprep.subr.bf16.mxu1 %v1171_v54  ;;  %v452_v54 = vld [vmem:[%s2053_s3 + $0x108] sm:$0xff]  ;;  %v1217_v56 = vpack.c.bf16 %v444_v51, %v437_v46  ;;  %v1247_v57 = vpack.c.bf16 %v446_v53, %v439_v52  ;;  %v523_v51 = vld [vmem:[%s2053_s3 + $0x340] sm:$0xff]  ;;  %v530_v52 = vld [vmem:[%s2053_s3 + $0x378] sm:$0xff] }
  0x4a   :  { %1188 = vmatprep.subr.bf16.mxu0 %v1187_v2  ;;  %v525_v2 = vld [vmem:[%s2053_s3 + $0x350] sm:$0xff] }
  0x4b   :  { %v1175_v4 = vpack.c.bf16 %v525_v2, %v518_v1  ;;  %v466_v1 = vld [vmem:[%s2053_s3 + $0x178] sm:$0xff]  ;;  %v473_v2 = vld [vmem:[%s2053_s3 + $0x1b0] sm:$0xff] }
  0x4c   :  { %1174 = vmatpush1.bf16.msra.mxu1 %v1173_v59  ;;  %v1219_v59 = vpack.c.bf16 %v459_v55, %v452_v54  ;;  %v1223_v6 = vpack.c.bf16 %v473_v2, %v466_v1  ;;  %v1265_v54 = vpack.c.bf16 %v530_v52, %v523_v51  ;;  %v533_v55 = vlaneseq }
  0x4d   :  { %1190 = vmatpush1.bf16.msra.mxu0 %v1189_v10  ;;  %v519_v10 = vld [vmem:[%s2053_s3 + $0x320] sm:$0xff]  ;;  %1176 = vmatprep.subr.bf16.mxu1 %v1175_v4 }
  0x4e   :  { %1192 = vmatprep.subr.bf16.mxu0 %v1191_v16  ;;  %v1209_v13 = vpack.c.bf16 %v526_v11, %v519_v10  ;;  %v1211_v16 = vpack.c.bf16 %v431_v15, %v424_v14  ;;  %v487_v10 = vld [vmem:[%s2053_s3 + $0x220] sm:$0xff]  ;;  %v1225_v11 = vpack.c.bf16 %v472_v7, %v465_v5 }
  0x4f   :  { %v479_v14 = vld [vmem:[%s2053_s3 + $0x1e0] sm:$0xff] }
  0x50   :  { %1178 = vmatpush1.bf16.msra.mxu1 %v1177_v9  ;;  %v480_v9 = vld [vmem:[%s2053_s3 + $0x1e8] sm:$0xff] }
  0x51   :  { %1194 = vmatpush1.bf16.msra.mxu0 %v1193_v25  ;;  %1212 = vmatprep.subr.bf16.mxu1 %v1211_v16  ;;  %v1227_v15 = vpack.c.bf16 %v487_v10, %v480_v9  ;;  %v486_v16 = vld [vmem:[%s2053_s3 + $0x218] sm:$0xff] }
  0x52   :  { %1196 = vmatprep.subr.bf16.mxu0 %v1195_v31 }
  0x55   :  { %1198 = vmatpush1.bf16.msra.mxu0 %v1197_v38  ;;  %v432_v38 = vld [vmem:[%s2053_s3 + $0x68] sm:$0xff] }
  0x56   :  { %1200 = vmatprep.subr.bf16.mxu0 %v1199_v40  ;;  %v445_v40 = vld [vmem:[%s2053_s3 + $0xd0] sm:$0xff]  ;;  %v1244_v45 = vpack.c.bf16 %v432_v38, %v425_v37  ;;  %v516_v38 = vld [vmem:[%s2053_s3 + $0x308] sm:$0xff] }
  0x57   :  { %v509_v37 = vld [vmem:[%s2053_s3 + $0x2d0] sm:$0xff] }
  0x59   :  { %1202 = vmatpush1.bf16.msra.mxu0 %v1201_v48  ;;  %v1215_v48 = vpack.c.bf16 %v445_v40, %v438_v39  ;;  %v522_v39 = vld [vmem:[%s2053_s3 + $0x338] sm:$0xff]  ;;  %v529_v40 = vld [vmem:[%s2053_s3 + $0x370] sm:$0xff] }
  0x5a   :  { %1204 = vmatprep.subr.bf16.mxu0 %v1203_v58  ;;  %v451_v58 = vld [vmem:[%s2053_s3 + $0x100] sm:$0xff]  ;;  %v1239_v46 = vpack.c.bf16 %v529_v40, %v522_v39 }
  0x5b   :  { %v1221_v3 = vpack.c.bf16 %v458_v62, %v451_v58 }
  0x5d   :  { %1206 = vmatpush1.bf16.msra.mxu0 %v1205_v0  ;;  %v460_v0 = vld [vmem:[%s2053_s3 + $0x148] sm:$0xff] }
  0x5e   :  { %1208 = vmatprep.subr.bf16.mxu0 %v1207_v8  ;;  %v1250_v4 = vpack.c.bf16 %v460_v0, %v453_v63  ;;  %v474_v8 = vld [vmem:[%s2053_s3 + $0x1b8] sm:$0xff] }
  0x61   :  { %1210 = vmatpush1.bf16.msra.mxu0 %v1209_v13 }
  0x62   :  { %1243 = vmatprep.subr.bf16.mxu0 %v1295_v50 }
  0xf7   :  { %v913_v17 = vpop.f32.mrb[0].mxu0 }
  0xf8   :  { %v914_v19 = vpop.f32.mrb[1].mxu0 }
  0xf9   :  { %v948_v20 = vpop.f32.mrb[0].mxu1  ;;  %v915_v22 = vadd.f32 %v914_v19, %v913_v17  ;;  %v481_v17 = vld [vmem:[%s2053_s3 + $0x1f0] sm:$0xff]  ;;  %v494_v19 = vld [vmem:[%s2053_s3 + $0x258] sm:$0xff] }
  0xfa   :  { %v949_v23 = vpop.f32.mrb[1].mxu1 }
  0xfb   :  { %v950_v24 = vadd.f32 %v949_v23, %v948_v20  ;;  %v204_v25 = vadd.f32 %v915_v22, %v879_v18  ;;  %v488_v18 = vld [vmem:[%s2053_s3 + $0x228] sm:$0xff]  ;;  %v501_v20 = vld [vmem:[%s2053_s3 + $0x290] sm:$0xff]  ;;  %v1229_v22 = vpack.c.bf16 %v486_v16, %v479_v14 }
  0xfc   :  { %v1256_v23 = vpack.c.bf16 %v488_v18, %v481_v17 }
  0xfd   :  { %v274_v26 = vadd.f32 %v950_v24, %v204_v25  ;;  %v413_v27 = vpop.f32.mrb[2].mxu1  ;;  %v493_v24 = vld [vmem:[%s2053_s3 + $0x250] sm:$0xff]  ;;  %v1231_v25 = vpack.c.bf16 %v501_v20, %v494_v19 }
  0xfe   :  { %v1012_v28 = vpop.f32.mrb[3].mxu1 }
  0xff   :  { %v502_v28 = vld [vmem:[%s2053_s3 + $0x298] sm:$0xff] }
 0x117   :  { %v983_v30 = vpop.f32.mrb[2].mxu0 }
 0x118   :  { %v984_v31 = vpop.f32.mrb[3].mxu0 }
 0x119   :  { %v985_v32 = vadd.f32 %v984_v31, %v983_v30  ;;  %v508_v30 = vld [vmem:[%s2053_s3 + $0x2c8] sm:$0xff]  ;;  %v515_v31 = vld [vmem:[%s2053_s3 + $0x300] sm:$0xff] }
 0x11b   :  { %v344_v33 = vadd.f32 %v985_v32, %v274_v26  ;;  %v500_v26 = vld [vmem:[%s2053_s3 + $0x288] sm:$0xff] }
 0x11c   :  { %v1233_v32 = vpack.c.bf16 %v500_v26, %v493_v24 }
 0x11d   :  { %v414_v35 = vadd.f32 %v413_v27, %v344_v33  ;;  %v495_v27 = vld [vmem:[%s2053_s3 + $0x260] sm:$0xff] }
 0x11e   :  { %v1259_v33 = vpack.c.bf16 %v502_v28, %v495_v27 }
 0x11f   :  { %v417_v42 = vmul.f32 0.01, %v414_v35 }
 0x121   :  { %v1894_v47 = vmax.f32 %v414_v35, %v417_v42  ;;  %v1235_v35 = vpack.c.bf16 %v515_v31, %v508_v30  ;;  %v1237_v42 = vpack.c.bf16 %v514_v36, %v507_v34 }
 0x123   :  { %633 = vmatmul.mubr.f32.vlgmr.msra.gmra.mrb[4].mxu1 %v1894_v47  ;;  %704 = vmatmul.mubr.f32.vlgmr.msra.gmra.mrb[4].mxu0 %v1894_v47 }
 0x124   :  { %1214 = vmatpush1.bf16.msra.mxu1 %v1213_v44  ;;  %1245 = vmatpush3.bf16.msra.mxu0 %v1244_v45  ;;  %v1262_v44 = vpack.c.bf16 %v516_v38, %v509_v37  ;;  %v521_v45 = vld [vmem:[%s2053_s3 + $0x330] sm:$0xff] }
 0x125   :  { %1216 = vmatprep.subr.bf16.mxu1 %v1215_v48  ;;  %1246 = vmatprep.subr.bf16.mxu0 %v1295_v50  ;;  %v528_v48 = vld [vmem:[%s2053_s3 + $0x368] sm:$0xff] }
 0x126   :  { %774 = vmatprep.mubr.f32.mxu1 %v1297_v60  ;;  %1045 = vmatprep.mubr.msk.f32.mxu0 %vm1296_vm0, %v1297_v60  ;;  %v467_v60 = vld [vmem:[%s2053_s3 + $0x180] sm:$0xff]  ;;  %v1241_v53 = vpack.c.bf16 %v528_v48, %v521_v45  ;;  %s1298_s3 = smov [#allocation2]  }
 0x127   :  { %v1253_v13 = vpack.c.bf16 %v474_v8, %v467_v60 }
 0x128   :  { %1218 = vmatpush1.bf16.msra.mxu1 %v1217_v56  ;;  %1248 = vmatpush3.bf16.msra.mxu0 %v1247_v57  ;;  %v534_v56 = vshrl.u32 %v533_v55, 7 }
 0x129   :  { %1220 = vmatprep.subr.bf16.mxu1 %v1219_v59  ;;  %1249 = vmatprep.subr.bf16.mxu0 %v1295_v50  ;;  %v531_v59 = vld [vmem:[%s2054_s4] sm:$0x7f]  ;;  %s871_s4 = sshll.u32 %s1298_s3, 4  ;;  %s872_s4 = int_to_ptr.vmem [resolvable:$true] %s871_s4 }
 0x12a   :  { %v535_v57 = vsub.s32 0, %v534_v56  ;;  %v543_v58 = vsub.s32 2, %v534_v56  ;;  %v539_v62 = vsub.s32 1, %v534_v56  ;;  %v547_v63 = vsub.s32 3, %v534_v56  ;;  %s1271_s9 = scalar_lea.vmem %s872_s4, 896  ;;  %p1276_p1 = scmp.lt.s32.totalorder %s872_s4, %s872_s4 }
 0x12b   :  { %v551_v14 = vsub.s32 4, %v534_v56  ;;  %v555_v16 = vsub.s32 5, %v534_v56  ;;  %p1272_p0 = scmp.ne.s32.totalorder %s872_s4, %s1271_s9  ;;  %p1277_p2 = scmp.lt.s32.totalorder %s1271_s9, %s1271_s9 }
 0x12c   :  { %1222 = vmatpush1.bf16.msra.mxu1 %v1221_v3  ;;  %1251 = vmatpush3.bf16.msra.mxu0 %v1250_v4  ;;  %v536_v0 = vrot.slane %v531_v59, %v535_v57  ;;  %v544_v1 = vrot.slane %v531_v59, %v543_v58  ;;  %v540_v2 = vrot.slane %v531_v59, %v539_v62 }
 0x12d   :  { %1224 = vmatprep.subr.bf16.mxu1 %v1223_v6  ;;  %1252 = vmatprep.subr.bf16.mxu0 %v1295_v50  ;;  %v552_v17 = vrot.slane %v531_v59, %v551_v14  ;;  %v556_v19 = vrot.slane %v531_v59, %v555_v16  ;;  %p1278_p3 = por %p1277_p2, %p1276_p1 }
 0x12f   :  { %p1279_p4 = pnand %p1278_p3, %p1272_p0 }
 0x130   :  { %1226 = vmatpush1.bf16.msra.mxu1 %v1225_v11  ;;  %1254 = vmatpush3.bf16.msra.mxu0 %v1253_v13 }
 0x131   :  { %1228 = vmatprep.subr.bf16.mxu1 %v1227_v15  ;;  %1255 = vmatprep.subr.bf16.mxu0 %v1295_v50  ;;  %v559_v15 = vsub.s32 6, %v534_v56 }
 0x133   :  { %v560_v18 = vrot.slane %v531_v59, %v559_v15 }
 0x134   :  { %1230 = vmatpush1.bf16.msra.mxu1 %v1229_v22  ;;  %1257 = vmatpush3.bf16.msra.mxu0 %v1256_v23 }
 0x135   :  { %1232 = vmatprep.subr.bf16.mxu1 %v1231_v25  ;;  %1258 = vmatprep.subr.bf16.mxu0 %v1295_v50 }
 0x138   :  { %1234 = vmatpush1.bf16.msra.mxu1 %v1233_v32  ;;  %1260 = vmatpush3.bf16.msra.mxu0 %v1259_v33 }
 0x139   :  { %1236 = vmatprep.subr.bf16.mxu1 %v1235_v35  ;;  %1261 = vmatprep.subr.bf16.mxu0 %v1295_v50 }
 0x13c   :  { %1238 = vmatpush1.bf16.msra.mxu1 %v1237_v42  ;;  %1263 = vmatpush3.bf16.msra.mxu0 %v1262_v44 }
 0x13d   :  { %1240 = vmatprep.subr.bf16.mxu1 %v1239_v46  ;;  %1264 = vmatprep.subr.bf16.mxu0 %v1295_v50  ;;  %v548_v50 = vrot.slane %v531_v59, %v547_v63 }
 0x140   :  { %1242 = vmatpush1.bf16.msra.mxu1 %v1241_v53  ;;  %1266 = vmatpush3.bf16.msra.mxu0 %v1265_v54 }
 0x143   :  { %775 = vmatmul.mubr.f32.vlgmr.msra.gmra.mrb[6].mxu1 %v1894_v47  ;;  %1046 = vmatmul.mubr.f32.vlgmr.msra.gmra.mrb[6].mxu0 %v1894_v47 }
 0x1f6   :  { %v634_v3 = vpop.f32.mrb[4].mxu1  ;;  %v705_v4 = vpop.f32.mrb[4].mxu0 }
 0x1f7   :  { %v635_v5 = vadd.f32 %v634_v3, %v536_v0  ;;  %v706_v6 = vadd.f32 %v705_v4, %v544_v1  ;;  %v636_v7 = vpop.f32.mrb[5].mxu1  ;;  %v707_v47 = vpop.f32.mrb[5].mxu0 }
 0x1f8   :  { %v637_v60 = vadd.f32 %v636_v7, %v540_v2  ;;  %v708_v8 = vadd.f32 %v707_v47, %v548_v50 }
 0x1f9   :  { %v851_v9 = vadd.f32 %v635_v5, %v1554_v41  ;;  %v853_v10 = vadd.f32 %v706_v6, %v1559_v43 }
 0x1fa   :  { %v852_v11 = vadd.f32 %v637_v60, %v1491_v12  ;;  %v854_v13 = vadd.f32 %v708_v8, %v1512_v21 }
 0x1fb   :  { %858 = vst [vmem:[#allocation2] sm:$0xff] %v851_v9  ;;  %860 = vst [vmem:[#allocation2 + $0x10] sm:$0xff] %v853_v10 }
 0x1fc   :  { %859 = vst [vmem:[#allocation2 + $0x8] sm:$0xff] %v852_v11  ;;  %861 = vst [vmem:[#allocation2 + $0x18] sm:$0xff] %v854_v13 }
 0x216   :  { %v776_v20 = vpop.f32.mrb[6].mxu1  ;;  %v847_v22 = vpop.f32.mrb[6].mxu0 }
 0x217   :  { %v777_v23 = vadd.f32 %v776_v20, %v552_v17  ;;  %v848_v41 = vadd.f32 %v847_v22, %v560_v18  ;;  %v778_v24 = vpop.f32.mrb[7].mxu1  ;;  %v1047_v43 = vpop.f32.mrb[7].mxu0 }
 0x218   :  { %v779_v12 = vadd.f32 %v778_v24, %v556_v19 }
 0x219   :  { %v855_v21 = vadd.f32 %v777_v23, %v1667_v29  ;;  %v857_v25 = vadd.f32 %v848_v41, %v1605_v61 }
 0x21a   :  { %v856_v26 = vadd.f32 %v779_v12, %v1576_v49 }
 0x21b   :  { %862 = vst [vmem:[#allocation2 + $0x20] sm:$0xff] %v855_v21  ;;  %864 = vst.msk [vmem:[#allocation2 + $0x30] sm:$0xff] %vm133_vm1, %v857_v25 }
 0x21c   :  { %863 = vst [vmem:[#allocation2 + $0x28] sm:$0xff] %v856_v26 }
 0x21d   :  { %1282 = shalt.err (!%p1279_p4)
}
 0x21e   :  { %s1283_s12 = scalar_lea.hbm %s2055_s5, 896 }
 0x21f   :  { %p1284_p5 = scmp.ne.s32.totalorder %s2055_s5, %s1283_s12  ;;  %p1287_p6 = scmp.lt.u32.totalorder %s1283_s12, %s2055_s5 }
 0x221   :  { %p1289_p7 = pnand %p1287_p6, %p1284_p5 }
 0x223   :  { %1292 = shalt.err (!%p1289_p7)
}
 0x224   :  { %874 = dma.vmem_to_hbm [thread:$0]  %s872_s4, 896, %s2055_s5, [#allocation3]  }
 0x225   :  { %1293 = dma.done.wait [#allocation3], 896  }
 0x226   :  { %1294 = vsyncadd [#allocation3], 4294966400 }
 0x227   :  { %878 = vsyncpa [#allocation3], 1 }

</bundles_post_ra>
